<compile_context>
chip_gen: v5e
topology: v5e:2x2
jax: 0.10.0
libtpu: 0.0.40
codegen_flags: <defaults>
</compile_context>

<pallas_src>
from functools import partial

import jax
import jax.numpy as jnp
from jax import lax
from jax.experimental import pallas as pl
from jax.experimental.pallas import tpu as pltpu


# --------------------------------------------------------------------------
# Hardware query (generation-aware VMEM budgets)
# --------------------------------------------------------------------------
def _vmem_capacity_bytes():
    try:
        info = pltpu.get_tpu_info()
        for name in ("vmem_capacity_bytes", "vmem_size_bytes", "vmem_bytes"):
            v = getattr(info, name, None)
            if v:
                return int(v)
    except Exception:
        pass
    try:
        kind = jax.devices()[0].device_kind.lower()
        if "v7" in kind:
            return 64 * 1024 * 1024
        if any(t in kind for t in ("v5", "v6")):
            return 128 * 1024 * 1024
    except Exception:
        pass
    return 64 * 1024 * 1024   # conservative (v7x-sized VMEM)


# --------------------------------------------------------------------------
# Fused single-pass kernel: one image's (C, HW) slab resident in VMEM
# --------------------------------------------------------------------------
def _scse_fused_kernel(x_ref, w1t_ref, w2_ref, ws_ref, o_ref, *, inv_hw):
    # x_ref:  (1, C, HW) input slab          w1t_ref: (C, Cr)  = W1.T (f32)
    # w2_ref: (C, Cr)    = W2 (f32)          ws_ref:  (C, 1)   sSE weight (f32)
    # o_ref:  (1, C, HW) output slab
    x = x_ref[0].astype(jnp.float32)                                   # (C, HW)

    # --- cSE: mean over HW, then the tiny 2-layer MLP on the VPU -----------
    mean = jnp.sum(x, axis=1, keepdims=True) * inv_hw                  # (C, 1)
    h = jnp.maximum(
        jnp.sum(w1t_ref[...] * mean, axis=0, keepdims=True), 0.0)      # (1, Cr)
    cse = jax.nn.sigmoid(
        jnp.sum(w2_ref[...] * h, axis=1, keepdims=True))               # (C, 1)

    # --- sSE: per-pixel channel-weighted sum (VPU mul + sublane reduce) ----
    sse = jax.nn.sigmoid(
        jnp.sum(x * ws_ref[...], axis=0, keepdims=True))               # (1, HW)

    # --- fused combine in f32, single cast at the end -----------------------
    o_ref[0] = (x * (cse + sse)).astype(o_ref.dtype)


# --------------------------------------------------------------------------
# Two-pass fallback: pass 1 — per-(N, C) channel partial sums
# --------------------------------------------------------------------------
def _cse_sums_kernel(x_ref, sums_ref, acc_ref):
    # x_ref:    (1, C, T)       HW tile of one image
    # sums_ref: (1, 1, C, 128)  per-(n, p) partial sums (lane reduce deferred)
    # acc_ref:  (C, 128)        f32 VPU accumulator (VMEM scratch)
    k = pl.program_id(2)

    @pl.when(k == 0)
    def _():
        acc_ref[...] = jnp.zeros_like(acc_ref)

    n128 = x_ref.shape[-1] // 128          # T is a multiple of 128 by design

    def body(j, acc):
        off = pl.multiple_of(j * 128, 128)
        return acc + x_ref[0, :, pl.ds(off, 128)].astype(jnp.float32)

    acc_ref[...] = lax.fori_loop(0, n128, body, acc_ref[...],
                                 unroll=min(8, n128))

    @pl.when(k == pl.num_programs(2) - 1)
    def _():
        sums_ref[0, 0] = acc_ref[...]


# --------------------------------------------------------------------------
# Two-pass fallback: pass 2 — out = x * (cSE + sSE), streamed over (N, HW)
# --------------------------------------------------------------------------
def _scse_apply_kernel(x_ref, cse_ref, ws_ref, o_ref):
    # x_ref: (1, C, T)   cse_ref: (1, C, 1) f32   ws_ref: (C, 1) f32
    x = x_ref[0].astype(jnp.float32)                                   # (C, T)
    sse = jax.nn.sigmoid(
        jnp.sum(x * ws_ref[...], axis=0, keepdims=True))               # (1, T)
    o_ref[0] = (x * (cse_ref[0] + sse)).astype(o_ref.dtype)            # f32 mul


def _pick_hw_tile(hw128, c, itemsize, target_bytes):
    """Largest multiple-of-128 divisor of hw128 (itself a multiple of 128)
    whose (C, T) tile stays under ~target_bytes."""
    max_t = max(128, (target_bytes // max(1, c * itemsize)) // 128 * 128)
    t = min(hw128, max_t)
    t = max(128, (t // 128) * 128)
    while hw128 % t != 0:
        t -= 128
    return t


def scse_pallas(x_nchw, w1_conv, w2_conv, ws_conv, *,
                force_two_pass=False, max_tile_bytes=None):
    """SCSE forward.

    x_nchw:  (N, C, H, W)
    w1_conv: (C//re, C)  cSE conv1 weight (PyTorch (out, in), 1x1 squeezed)
    w2_conv: (C, C//re)  cSE conv2 weight
    ws_conv: (1, C)      sSE conv weight
    """
    N, C, H, W = x_nchw.shape
    HW = H * W
    itemsize = jnp.dtype(x_nchw.dtype).itemsize

    w1 = jnp.asarray(w1_conv, jnp.float32).reshape(w1_conv.shape[0], -1)  # (Cr, C)
    w2 = jnp.asarray(w2_conv, jnp.float32).reshape(w2_conv.shape[0], -1)  # (C, Cr)
    Cr = w1.shape[0]
    ws_col = jnp.asarray(ws_conv, jnp.float32).reshape(C, 1)              # (C, 1)

    # NCHW-native: free reshape, HW lands on the lane axis.
    x = x_nchw.reshape(N, C, HW)

    # ---- generation-aware budgets -------------------------------------------
    phys = _vmem_capacity_bytes()
    big_vmem = phys >= 128 * 1024 * 1024
    if big_vmem:                      # v5e / v6e: 128 MiB physical VMEM
        fused_vmem_limit = 112 * 1024 * 1024
        fused_threshold = 96 * 1024 * 1024
        two_pass_vmem_limit = 64 * 1024 * 1024
        tile_target = 6 * 1024 * 1024
    else:                             # v7x: 64 MiB physical VMEM
        fused_vmem_limit = 48 * 1024 * 1024
        fused_threshold = 36 * 1024 * 1024
        two_pass_vmem_limit = 32 * 1024 * 1024
        tile_target = 3 * 1024 * 1024
    if max_tile_bytes is not None:
        tile_target = max_tile_bytes

    # ---- fast path: fully fused single pass ---------------------------------
    slab_in = C * HW * itemsize
    slab_f32 = C * HW * 4
    est_fused = 4 * slab_in + 2 * slab_f32 + (1 << 20)   # in/out dbuf + f32 temps

    if (not force_two_pass) and est_fused <= fused_threshold:
        w1t = w1.T                                        # (C, Cr)
        out = pl.pallas_call(
            partial(_scse_fused_kernel, inv_hw=1.0 / float(HW)),
            out_shape=jax.ShapeDtypeStruct((N, C, HW), x.dtype),
            grid_spec=pltpu.PrefetchScalarGridSpec(
                num_scalar_prefetch=0,
                grid=(N,),
                in_specs=[
                    pl.BlockSpec((1, C, HW), lambda n: (n, 0, 0)),
                    pl.BlockSpec((C, Cr), lambda n: (0, 0)),
                    pl.BlockSpec((C, Cr), lambda n: (0, 0)),
                    pl.BlockSpec((C, 1), lambda n: (0, 0)),
                ],
                out_specs=pl.BlockSpec((1, C, HW), lambda n: (n, 0, 0)),
            ),
            compiler_params=pltpu.CompilerParams(
                dimension_semantics=("parallel",),
                vmem_limit_bytes=fused_vmem_limit),
            cost_estimate=pl.CostEstimate(
                flops=5 * N * C * HW,
                transcendentals=N * (HW + C),
                bytes_accessed=2 * N * C * HW * itemsize),
        )(x, w1t, w2, ws_col)
        return out.reshape(N, C, H, W)

    # ---- fallback: two streaming passes --------------------------------------
    # Zero-pad HW to a multiple of 128 (zeros don't perturb the channel sums,
    # padded output columns are sliced away) so every shape tiles cleanly.
    HWp = HW if HW % 128 == 0 else ((HW + 127) // 128) * 128
    xp = x if HWp == HW else jnp.pad(x, ((0, 0), (0, 0), (0, HWp - HW)))

    T = _pick_hw_tile(HWp, C, itemsize, tile_target)
    Ktot = HWp // T
    P = 2 if (Ktot >= 2 and Ktot % 2 == 0) else 1   # parallel HW split (v7x megacore)
    K = Ktot // P

    # pass 1: channel partial sums (lane reduce deferred to JAX)
    sums = pl.pallas_call(
        _cse_sums_kernel,
        out_shape=jax.ShapeDtypeStruct((N, P, C, 128), jnp.float32),
        grid_spec=pltpu.PrefetchScalarGridSpec(
            num_scalar_prefetch=0,
            grid=(N, P, K),
            in_specs=[pl.BlockSpec((1, C, T),
                                   lambda n, p, k: (n, 0, p * K + k))],
            out_specs=pl.BlockSpec((1, 1, C, 128),
                                   lambda n, p, k: (n, p, 0, 0)),
            scratch_shapes=[pltpu.VMEM((C, 128), jnp.float32)],
        ),
        compiler_params=pltpu.CompilerParams(
            dimension_semantics=("parallel", "parallel", "arbitrary"),
            vmem_limit_bytes=two_pass_vmem_limit),
        cost_estimate=pl.CostEstimate(
            flops=N * C * HWp,
            transcendentals=0,
            bytes_accessed=N * C * HWp * itemsize),
    )(xp)

    # Tiny cSE MLP in plain JAX (hoisted out of the kernel; no width-1 MXU ops).
    hp = lax.Precision.HIGHEST
    ch_sum = jnp.sum(sums, axis=(1, 3))                              # (N, C)
    mean = ch_sum * (1.0 / float(HW))                                # true HW mean
    h = jax.nn.relu(jnp.einsum('nc,rc->nr', mean, w1, precision=hp))  # (N, Cr)
    cse = jax.nn.sigmoid(jnp.einsum('nr,cr->nc', h, w2, precision=hp))  # (N, C)
    cse = cse[:, :, None].astype(jnp.float32)                        # (N, C, 1)

    # pass 2: apply scales, fully parallel streaming pass
    out = pl.pallas_call(
        _scse_apply_kernel,
        out_shape=jax.ShapeDtypeStruct((N, C, HWp), x.dtype),
        grid_spec=pltpu.PrefetchScalarGridSpec(
            num_scalar_prefetch=0,
            grid=(N, Ktot),
            in_specs=[
                pl.BlockSpec((1, C, T), lambda n, k: (n, 0, k)),
                pl.BlockSpec((1, C, 1), lambda n, k: (n, 0, 0)),
                pl.BlockSpec((C, 1), lambda n, k: (0, 0)),
            ],
            out_specs=pl.BlockSpec((1, C, T), lambda n, k: (n, 0, k)),
        ),
        compiler_params=pltpu.CompilerParams(
            dimension_semantics=("parallel", "parallel"),
            vmem_limit_bytes=two_pass_vmem_limit),
        cost_estimate=pl.CostEstimate(
            flops=5 * N * C * HWp,
            transcendentals=N * HWp,
            bytes_accessed=2 * N * C * HWp * itemsize),
    )(xp, cse, ws_col)

    if HWp != HW:
        out = out[:, :, :HW]
    return out.reshape(N, C, H, W)


def scse_ref(x, w1_conv, w2_conv, ws_conv):
    """Pure-JAX reference matching the PyTorch module (NCHW, bias=False convs)."""
    hp = lax.Precision.HIGHEST
    mean = jnp.mean(x, axis=(2, 3), keepdims=True)                           # (N,C,1,1)
    h = jax.nn.relu(jnp.einsum('nchw,oc->nohw', mean, w1_conv, precision=hp))
    cse = jax.nn.sigmoid(jnp.einsum('nchw,oc->nohw', h, w2_conv, precision=hp))
    sse = jax.nn.sigmoid(jnp.einsum('nchw,oc->nohw', x, ws_conv, precision=hp))
    return x * cse + x * sse


if __name__ == "__main__":
    key = jax.random.PRNGKey(0)
    kx, k1, k2, k3, kx2, kx3 = jax.random.split(key, 6)

    # --- Case 1: main shape -> fused single-pass path ------------------------
    N, C, H, W = 2, 4, 16, 16
    re = 2
    Cr = C // re
    x = jax.random.normal(kx, (N, C, H, W), dtype=jnp.float32)
    w1 = jax.random.normal(k1, (Cr, C), dtype=jnp.float32) * 0.5   # cSE conv1
    w2 = jax.random.normal(k2, (C, Cr), dtype=jnp.float32) * 0.5   # cSE conv2
    ws = jax.random.normal(k3, (1, C), dtype=jnp.float32) * 0.5    # sSE conv

    out = jax.block_until_ready(scse_pallas(x, w1, w2, ws))
    ref = scse_ref(x, w1, w2, ws)
    assert out.shape == ref.shape == (N, C, H, W)
    assert jnp.allclose(out, ref, atol=1e-4, rtol=1e-4), "fused path mismatch"

    # --- Case 2: force two-pass fallback with tiny tiles ----------------------
    # (exercises the parallel HW split P=2 and the k-accumulation loop)
    C2, Cr2 = 8, 4
    x2 = jax.random.normal(kx2, (2, C2, 16, 32), dtype=jnp.float32)
    w1b = jax.random.normal(k1, (Cr2, C2), dtype=jnp.float32) * 0.5
    w2b = jax.random.normal(k2, (C2, Cr2), dtype=jnp.float32) * 0.5
    wsb = jax.random.normal(k3, (1, C2), dtype=jnp.float32) * 0.5
    out2 = jax.block_until_ready(
        scse_pallas(x2, w1b, w2b, wsb, force_two_pass=True,
                    max_tile_bytes=C2 * 128 * 4))   # T=128 -> Ktot=4 -> P=2, K=2
    ref2 = scse_ref(x2, w1b, w2b, wsb)
    assert jnp.allclose(out2, ref2, atol=1e-4, rtol=1e-4), "two-pass mismatch"

    # --- Case 3: HW not a multiple of 128 -> zero-padding path ----------------
    x3 = jax.random.normal(kx3, (1, C2, 10, 10), dtype=jnp.float32)
    out3 = jax.block_until_ready(
        scse_pallas(x3, w1b, w2b, wsb, force_two_pass=True))
    ref3 = scse_ref(x3, w1b, w2b, wsb)
    assert jnp.allclose(out3, ref3, atol=1e-4, rtol=1e-4), "padded path mismatch"

    print("KERNEL_OK")
</pallas_src>

<mosaic_0001>
module attributes {stable_mosaic.version = 11 : i64} {
  func.func @_scse_fused_kernel(%arg0: i32, %arg1: memref<1x4x256xf32, #tpu.memory_space<vmem>>, %arg2: memref<4x2xf32, #tpu.memory_space<vmem>>, %arg3: memref<4x2xf32, #tpu.memory_space<vmem>>, %arg4: memref<4x1xf32, #tpu.memory_space<vmem>>, %arg5: memref<1x4x256xf32, #tpu.memory_space<vmem>>) attributes {dimension_semantics = [#tpu.dimension_semantics<parallel>], iteration_bounds = array<i64: 2>, scalar_prefetch = 0 : i64, scratch_operands = 0 : i64, tpu.core_type = #tpu.core_type<tc>, window_params = [{transform_indices = @transform_0, window_bounds = array<i64: 1, 4, 256>}, {pipeline_mode = #tpu.pipeline_mode<synchronous>, transform_indices = @transform_1, window_bounds = array<i64: 4, 2>}, {pipeline_mode = #tpu.pipeline_mode<synchronous>, transform_indices = @transform_2, window_bounds = array<i64: 4, 2>}, {pipeline_mode = #tpu.pipeline_mode<synchronous>, transform_indices = @transform_3, window_bounds = array<i64: 4, 1>}, {transform_indices = @transform_4, window_bounds = array<i64: 1, 4, 256>}]} {
    %c0 = arith.constant 0 : index
    %c0_0 = arith.constant 0 : index
    %c0_1 = arith.constant 0 : index
    %0 = vector.load %arg1[%c0, %c0_0, %c0_1] : memref<1x4x256xf32, #tpu.memory_space<vmem>>, vector<1x4x256xf32>
    %1 = vector.shape_cast %0 : vector<1x4x256xf32> to vector<4x256xf32>
    %cst = arith.constant dense<0.000000e+00> : vector<4xf32>
    %2 = vector.multi_reduction <add>, %1, %cst [1] : vector<4x256xf32> to vector<4xf32>
    %3 = vector.shape_cast %2 : vector<4xf32> to vector<4x1xf32>
    %cst_2 = arith.constant 3.906250e-03 : f32
    %4 = vector.broadcast %cst_2 : f32 to vector<4x1xf32>
    %5 = arith.mulf %3, %4 : vector<4x1xf32>
    %c0_3 = arith.constant 0 : index
    %c0_4 = arith.constant 0 : index
    %6 = vector.load %arg2[%c0_3, %c0_4] : memref<4x2xf32, #tpu.memory_space<vmem>>, vector<4x2xf32>
    %7 = vector.broadcast %5 : vector<4x1xf32> to vector<4x2xf32>
    %8 = arith.mulf %6, %7 : vector<4x2xf32>
    %cst_5 = arith.constant dense<0.000000e+00> : vector<2xf32>
    %9 = vector.multi_reduction <add>, %8, %cst_5 [0] : vector<4x2xf32> to vector<2xf32>
    %10 = vector.shape_cast %9 : vector<2xf32> to vector<1x2xf32>
    %cst_6 = arith.constant 0.000000e+00 : f32
    %11 = vector.broadcast %cst_6 : f32 to vector<1x2xf32>
    %12 = arith.maximumf %10, %11 : vector<1x2xf32>
    %c0_7 = arith.constant 0 : index
    %c0_8 = arith.constant 0 : index
    %13 = vector.load %arg3[%c0_7, %c0_8] : memref<4x2xf32, #tpu.memory_space<vmem>>, vector<4x2xf32>
    %14 = vector.broadcast %12 : vector<1x2xf32> to vector<4x2xf32>
    %15 = arith.mulf %13, %14 : vector<4x2xf32>
    %cst_9 = arith.constant dense<0.000000e+00> : vector<4xf32>
    %16 = vector.multi_reduction <add>, %15, %cst_9 [1] : vector<4x2xf32> to vector<4xf32>
    %17 = vector.shape_cast %16 : vector<4xf32> to vector<4x1xf32>
    %18 = arith.negf %17 : vector<4x1xf32>
    %19 = math.exp %18 : vector<4x1xf32>
    %cst_10 = arith.constant 1.000000e+00 : f32
    %20 = vector.broadcast %cst_10 : f32 to vector<4x1xf32>
    %21 = arith.addf %20, %19 : vector<4x1xf32>
    %22 = arith.divf %20, %21 : vector<4x1xf32>
    %c0_11 = arith.constant 0 : index
    %c0_12 = arith.constant 0 : index
    %23 = vector.load %arg4[%c0_11, %c0_12] : memref<4x1xf32, #tpu.memory_space<vmem>>, vector<4x1xf32>
    %24 = vector.broadcast %23 : vector<4x1xf32> to vector<4x256xf32>
    %25 = arith.mulf %1, %24 : vector<4x256xf32>
    %cst_13 = arith.constant dense<0.000000e+00> : vector<256xf32>
    %26 = vector.multi_reduction <add>, %25, %cst_13 [0] : vector<4x256xf32> to vector<256xf32>
    %27 = vector.shape_cast %26 : vector<256xf32> to vector<1x256xf32>
    %28 = arith.negf %27 : vector<1x256xf32>
    %29 = math.exp %28 : vector<1x256xf32>
    %cst_14 = arith.constant 1.000000e+00 : f32
    %30 = vector.broadcast %cst_14 : f32 to vector<1x256xf32>
    %31 = arith.addf %30, %29 : vector<1x256xf32>
    %32 = arith.divf %30, %31 : vector<1x256xf32>
    %33 = vector.broadcast %22 : vector<4x1xf32> to vector<4x256xf32>
    %34 = vector.broadcast %32 : vector<1x256xf32> to vector<4x256xf32>
    %35 = arith.addf %33, %34 : vector<4x256xf32>
    %36 = arith.mulf %1, %35 : vector<4x256xf32>
    %c0_15 = arith.constant 0 : index
    %c0_16 = arith.constant 0 : index
    %c0_17 = arith.constant 0 : index
    %37 = vector.load %arg5[%c0_15, %c0_16, %c0_17] : memref<1x4x256xf32, #tpu.memory_space<vmem>>, vector<1x4x256xf32>
    %38 = vector.shape_cast %37 : vector<1x4x256xf32> to vector<4x256xf32>
    %39 = vector.shape_cast %36 : vector<4x256xf32> to vector<1x4x256xf32>
    tpu.vector_store %arg5[%c0_15, %c0_16, %c0_17], %39 {strides = array<i32>} : memref<1x4x256xf32, #tpu.memory_space<vmem>>, vector<1x4x256xf32>,
    return
  }
  func.func @transform_0(%arg0: i32) -> (i32, i32, i32) {
    %c0_i32 = arith.constant 0 : i32
    %c0_i32_0 = arith.constant 0 : i32
    %c0_i32_1 = arith.constant 0 : i32
    return %arg0, %c0_i32, %c0_i32_0 : i32, i32, i32
  }
  func.func @transform_1(%arg0: i32) -> (i32, i32) {
    %c0_i32 = arith.constant 0 : i32
    %c0_i32_0 = arith.constant 0 : i32
    %c0_i32_1 = arith.constant 0 : i32
    return %c0_i32, %c0_i32_0 : i32, i32
  }
  func.func @transform_2(%arg0: i32) -> (i32, i32) {
    %c0_i32 = arith.constant 0 : i32
    %c0_i32_0 = arith.constant 0 : i32
    %c0_i32_1 = arith.constant 0 : i32
    return %c0_i32, %c0_i32_0 : i32, i32
  }
  func.func @transform_3(%arg0: i32) -> (i32, i32) {
    %c0_i32 = arith.constant 0 : i32
    %c0_i32_0 = arith.constant 0 : i32
    %c0_i32_1 = arith.constant 0 : i32
    return %c0_i32, %c0_i32_0 : i32, i32
  }
  func.func @transform_4(%arg0: i32) -> (i32, i32, i32) {
    %c0_i32 = arith.constant 0 : i32
    %c0_i32_0 = arith.constant 0 : i32
    %c0_i32_1 = arith.constant 0 : i32
    return %arg0, %c0_i32, %c0_i32_0 : i32, i32, i32
  }
}

</mosaic_0001>

<bundles_post_ra>
// kernel: tpu_custom_call.1
= control target key start
LH: loop header
LB: loop body
LE: loop exit
PB: predicated region body
PF: predicated region fallthrough
CT: control target
= control target key end

     0   :  { %9 = vsyncpa [#allocation3], 0  ;;  %s684_s0 = inlined_call_operand.vmem [shape: f32[2,4,256], index: 0, kind: input, shape index: {}]   ;;  %s685_s1 = inlined_call_operand.vmem [shape: f32[4,2], index: 1, kind: input, shape index: {}]   ;;  %s686_s2 = inlined_call_operand.vmem [shape: f32[4,2], index: 2, kind: input, shape index: {}]   ;;  %s687_s3 = inlined_call_operand.vmem [shape: f32[4,1], index: 3, kind: input, shape index: {}]   ;;  %s688_s4 = inlined_call_operand.hbm [shape: f32[2,4,256], index: 4, kind: output, shape index: {}]  }
   0x1   :  { %11 = vsyncpa [#allocation3 + $0x1], 0  ;;  %s561_s15 = smov 0   ;;  %s563_s16 = smov 0  }
   0x2   :  { %s565_s17 = smov 0   ;;  %s567_s18 = smov 0  }
   0x3 LB: > { %s582_s19 = sadd.s32 4294967295, %s532_s18   ;;  %s399_s20 = sadd.s32 4294967294, %s532_s18   ;;  %s532_s18 = sphi %s567_s18, %s698_s18   ;;  %s528_s17 = sphi %s565_s17, %s697_s17   ;;  %s524_s16 = sphi %s563_s16, %s696_s16   ;;  %s520_s15 = sphi %s561_s15, %s695_s15  }
   0x4   : > { %s586_s21 = sadd.s32 1, %s532_s18   ;;  %s113_s22 = sadd.s32 1, %s528_s17 }
   0x5   : > { %s110_s23 = ssub.s32 %s532_s18, %s586_s21  ;;  %p123_p0 = scmp.ne.s32.totalorder %s528_s17, %s524_s16 }
   0x6   : > { %p111_p1 = scmp.eq.s32.totalorder %s110_s23, 0  ;;  %p124_p2 = scmp.eq.s32.totalorder %s582_s19, 1 }
   0x7   : > { %p129_p3 = scmp.ne.s32.totalorder %s524_s16, %s520_s15  ;;  %p130_p4 = scmp.eq.s32.totalorder %s399_s20, 1 }
   0x8   : > { %s597_s24 = scalar_select %p111_p1, %s528_s17, %s113_s22  }
   0x9   : > { %p599_p5 = por %p124_p2, %p123_p0  ;;  %p603_p6 = por %p130_p4, %p129_p3 }
   0xa   : > { %p402_p7 = scmp.ge.s32.totalorder %s532_s18, 1  ;;  %p165_p8 = scmp.lt.s32.totalorder %s532_s18, 3 }
   0xc   : > { %p166_p9 = pnand %p402_p7, %p165_p8 }
   0xd   : > { %p191_p10 = scmp.lt.s32.totalorder (!%p166_p9), %s582_s19, 1  ;;  %s188_s12 = sand.u32 (!%p166_p9), 1, %s524_s16  }
   0xe   : > { %169 = sbr.rel (%p166_p9) target bundleno = 327 (0x147), region = 36  ;;  %s403_s13 = sshll.u32 (!%p166_p9), %s188_s12, 3 }
   0xf   : > { %s415_s14 = sshll.u32 (!%p166_p9), %s582_s19, 3  ;;  %s324_s29 = scalar_lea.sflag (!%p166_p9), [#allocation3], %s188_s12 }
  0x10   : > { %s335_s23 = scalar_lea.hbm (!%p166_p9), %s688_s4, %s415_s14  ;;  %s490_s8 = scalar_lea.hbm (!%p166_p9), %s688_s4, 16 }
  0x13   : > { %v534_v0 = vmov 0   ;;  %s192_s27 = scalar_select %p191_p10, %s582_s19, 1  ;;  %vm203_vm0 = vcmask 1043456   ;;  %v245_v7 = vld [vmem:[%s687_s3] sm:$0xf]  ;;  %vm212_vm1 = vcmask 11264  }
  0x14   : > { %457 = vset.pattern.permute.xlu0 %v534_v0  ;;  %v210_v8 = vld [vmem:[%s685_s1] sm:$0xf]  ;;  %v535_v17 = vmov 839922192   ;;  %s190_s19 = scalar_lea.vmem [#allocation2], %s403_s13 }
  0x15   : > { %s414_s28 = sshll.u32 %s192_s27, 3  ;;  %v251_v18 = vunpack.c.l.s4 %v535_v17  ;;  %v221_v22 = vld [vmem:[%s686_s2] sm:$0xf]  ;;  %s337_s27 = sshll.u32 %s190_s19, 4  ;;  %s338_s27 = int_to_ptr.vmem [resolvable:$true] %s337_s27 }
  0x16   : > { %s195_s5 = scalar_lea.vmem %s684_s0, %s414_s28  ;;  %s339_s28 = sshll.u32 %s335_s23, 4  ;;  %s340_s28 = int_to_ptr.hbm [resolvable:$true] %s339_s28 }
  0x17   : > { %v614_v1 = vld [vmem:[%s195_s5] sm:$0xff]  ;;  %v252_v21 = vunpack.c.0.s8 %v251_v18  ;;  %s484_s30 = sshra.s32 %s340_s28, 4  ;;  %s485_s30 = int_to_ptr.hbm [resolvable:$true] %s484_s30 }
  0x18   : > { %198 = vst [vmem:[#allocation1] ss:$2 sm:$0xff] %v614_v1  ;;  %s486_s5 = scalar_lea.hbm %s485_s30, 8  ;;  %p491_p0 = scmp.lt.s32.totalorder %s485_s30, %s688_s4 }
  0x19   : > { %p487_p11 = scmp.ne.s32.totalorder %s485_s30, %s486_s5  ;;  %p492_p1 = scmp.lt.s32.totalorder %s490_s8, %s486_s5 }
  0x1b   : > { %p488_p12 = pnand %p487_p11, %p599_p5  ;;  %p493_p2 = por %p492_p1, %p491_p0 }
  0x1d   : > { %p489_p13 = pneg %p488_p12 }
  0x1f   : > { %v199_v2 = vld.sshfl [vmem:[#allocation1] sm:$0xff pattern:$0x75316420]  ;;  %v200_v3 = vld.sshfl [vmem:[#allocation1 + $0x8] sm:$0xff pattern:$0x75316420]  ;;  %p494_p3 = pnand %p493_p2, %p489_p13 }
  0x20   : > { %v204_v4 = vsel %vm203_vm0, %v199_v2, 0.0  ;;  %v205_v5 = vsel %vm203_vm0, %v200_v3, 0.0 }
  0x21   : > { %v206_v6 = vadd.f32 %v205_v5, %v204_v4 }
  0x23   : > { %207 = vadd.xlane.f32.xlu0 %v206_v6 }
  0x37   : > { %248 = vperm.xlu0 %457, %v245_v7  }
  0x96   : > { %v208_v9 = vpop.xlane.xlu0 %207 }
  0x97   : > { %v209_v10 = vmul.f32 0.00390625, %v208_v9 }
  0x99   : > { %v211_v11 = vmul.f32 %v210_v8, %v209_v10 }
  0x9b   : > { %v213_v12 = vsel %vm212_vm1, %v211_v11, 0.0 }
  0x9c   : > { %v214_v13 = vrot.slane %v213_v12, 4 }
  0x9e   : > { %v215_v14 = vadd.f32 %v214_v13, %v213_v12 }
  0xa0   : > { %v216_v15 = vrot.slane %v215_v14, 2 }
  0xa2   : > { %v217_v16 = vadd.f32 %v216_v15, %v215_v14 }
  0xa4   : > { %v218_v19 = vrot.slane %v217_v16, 1 }
  0xa6   : > { %v219_v20 = vadd.f32 %v218_v19, %v217_v16 }
  0xa8   : > { %v220_v23 = vmax.f32 %v219_v20, 0.0 }
  0xa9   : > { %v249_v24 = vpop.permute.xlu0 %248 }
  0xaa   : > { %v222_v25 = vmul.f32 %v221_v22, %v220_v23  ;;  %v253_v26 = vperm.slane %v249_v24, %v252_v21 }
  0xac   : > { %v223_v27 = vsel %vm212_vm1, %v222_v25, 0.0  ;;  %v255_v28 = vmul.f32 %v253_v26, %v614_v1 }
  0xad   : > { %224 = vadd.xlane.f32.xlu1 %v223_v27 }
  0xae   : > { %257 = vst [vmem:[#allocation1] ss:$2 sm:$0xff] %v255_v28 }
  0xb5   : > { %v259_v29 = vld.sshfl [vmem:[#allocation1 + $0x8] sm:$0xff pattern:$0x75316420]  ;;  %v258_v30 = vld.sshfl [vmem:[#allocation1] sm:$0xff pattern:$0x75316420] }
  0xb6   : > { %v269_v31 = vsel %vm203_vm0, %v259_v29, 0.0  ;;  %v262_v32 = vsel %vm203_vm0, %v258_v30, 0.0 }
  0xb7   : > { %v270_v33 = vrot.slane %v269_v31, 4  ;;  %v263_v34 = vrot.slane %v262_v32, 4 }
  0xb9   : > { %v271_v35 = vadd.f32 %v270_v33, %v269_v31  ;;  %v264_v36 = vadd.f32 %v263_v34, %v262_v32 }
  0xbb   : > { %v272_v37 = vrot.slane %v271_v35, 2  ;;  %v265_v38 = vrot.slane %v264_v36, 2 }
  0xbd   : > { %v273_v39 = vadd.f32 %v272_v37, %v271_v35  ;;  %v266_v40 = vadd.f32 %v265_v38, %v264_v36 }
  0xbf   : > { %v274_v41 = vrot.slane %v273_v39, 1  ;;  %v267_v42 = vrot.slane %v266_v40, 1 }
  0xc1   : > { %v275_v43 = vadd.f32 %v274_v41, %v273_v39  ;;  %v268_v44 = vadd.f32 %v267_v42, %v266_v40 }
  0xc3   : > { %v408_v45 = vmul.f32 -1.442695, %v275_v43  ;;  %v407_v46 = vmul.f32 -1.442695, %v268_v44 }
  0xc5   : > { %458 = vpow2.f32 %v408_v45 }
  0xc6   : > { %460 = vpow2.f32 %v407_v46 }
  0xcb   : > { %v459_v47 = vpop.eup %458 }
  0xcc   : > { %v461_v48 = vpop.eup %460  ;;  %v283_v49 = vadd.f32 1.0, %v459_v47 }
  0xcd   : > { %v282_v50 = vadd.f32 1.0, %v461_v48 }
  0xce   : > { %462 = vrcp.f32 %v283_v49  ;;  %vm304_vm2 = vweird.f32 %v283_v49  ;;  %v310_v2 = vand.u32 2147483648, %v283_v49  ;;  %v308_v5 = vand.u32 2147483647, %v283_v49 }
  0xcf   : > { %464 = vrcp.f32 %v282_v50  ;;  %vm289_vm4 = vweird.f32 %v282_v50  ;;  %v295_v8 = vand.u32 2147483648, %v282_v50  ;;  %v293_v12 = vand.u32 2147483647, %v282_v50 }
  0xd0   : > { %v311_v14 = vor.u32 1.1754944e-38, %v310_v2  ;;  %vm309_vm10 = vcmp.eq.f32.partialorder %v308_v5, 8.507059e+37 }
  0xd1   : > { %v296_v18 = vor.u32 1.1754944e-38, %v295_v8  ;;  %vm294_vm13 = vcmp.eq.f32.partialorder %v293_v12, 8.507059e+37 }
  0xd4   : > { %v463_v53 = vpop.eup %462 }
  0xd5   : > { %v465_v54 = vpop.eup %464  ;;  %v300_v56 = vmul.f32 %v463_v53, %v283_v49  ;;  %vm305_vm3 = vweird.f32 %v463_v53 }
  0xd6   : > { %v285_v58 = vmul.f32 %v465_v54, %v282_v50  ;;  %vm290_vm5 = vweird.f32 %v465_v54  ;;  %vm634_vm6 = vmor %vm304_vm2, %vm305_vm3 }
  0xd7   : > { %v301_v59 = vsub.f32 1.0, %v300_v56  ;;  %vm639_vm8 = vmor %vm289_vm4, %vm290_vm5 }
  0xd8   : > { %v286_v60 = vsub.f32 1.0, %v285_v58 }
  0xd9   : > { %v302_v61 = vmul.f32 %v463_v53, %v301_v59 }
  0xda   : > { %v287_v63 = vmul.f32 %v465_v54, %v286_v60 }
  0xdb   : > { %v303_v4 = vadd.f32 %v463_v53, %v302_v61 }
  0xdc   : > { %v288_v7 = vadd.f32 %v465_v54, %v287_v63 }
  0xdd   : > { %v307_v16 = vsel %vm634_vm6, %v463_v53, %v303_v4 }
  0xde   : > { %v292_v20 = vsel %vm639_vm8, %v465_v54, %v288_v7  ;;  %v312_v22 = vsel %vm309_vm10, %v311_v14, %v307_v16 }
  0xdf   : > { %v297_v24 = vsel %vm294_vm13, %v296_v18, %v292_v20 }
 0x120   : > { %v225_v51 = vpop.xlane.xlu1 %224 }
 0x121   : > { %v406_v52 = vmul.f32 -1.442695, %v225_v51 }
 0x123   : > { %466 = vpow2.f32 %v406_v52 }
 0x129   : > { %v467_v55 = vpop.eup %466 }
 0x12a   : > { %v229_v57 = vadd.f32 1.0, %v467_v55 }
 0x12c   : > { %468 = vrcp.f32 %v229_v57  ;;  %v241_v6 = vand.u32 2147483648, %v229_v57  ;;  %v239_v11 = vand.u32 2147483647, %v229_v57  ;;  %vm235_vm9 = vweird.f32 %v229_v57 }
 0x12e   : > { %v242_v17 = vor.u32 1.1754944e-38, %v241_v6  ;;  %vm240_vm12 = vcmp.eq.f32.partialorder %v239_v11, 8.507059e+37 }
 0x132   : > { %v469_v62 = vpop.eup %468 }
 0x133   : > { %v231_v0 = vmul.f32 %v469_v62, %v229_v57  ;;  %vm236_vm7 = vweird.f32 %v469_v62 }
 0x134   : > { %vm237_vm11 = vmor %vm235_vm9, %vm236_vm7 }
 0x135   : > { %v232_v3 = vsub.f32 1.0, %v231_v0 }
 0x137   : > { %v233_v10 = vmul.f32 %v469_v62, %v232_v3 }
 0x139   : > { %v234_v15 = vadd.f32 %v469_v62, %v233_v10 }
 0x13b   : > { %v238_v19 = vsel %vm237_vm11, %v469_v62, %v234_v15 }
 0x13c   : > { %v243_v21 = vsel %vm240_vm12, %v242_v17, %v238_v19 }
 0x13d   : > { %v315_v23 = vadd.f32 %v312_v22, %v243_v21  ;;  %v314_v25 = vadd.f32 %v297_v24, %v243_v21 }
 0x13f   : > { %v318_v26 = vrot.slane %v315_v23, 4 }
 0x141   : > { %v319_v27 = vsel %vm203_vm0, %v314_v25, %v318_v26 }
 0x142   : > { %v321_v28 = vmul.f32 %v319_v27, %v614_v1 }
 0x144   : > { %322 = vst [vmem:[%s190_s19] sm:$0xff] %v321_v28 }
 0x145   : > { %497 = shalt.err (!%p494_p3)
}
 0x146   : > { %416 = dma.vmem_to_hbm [thread:$0]  (%p599_p5), %s338_s27, 128, %s340_s28, %s324_s29  }
 0x147 PF: > { %p422_p4 = scmp.ge.s32.totalorder %s532_s18, 2  ;;  %s351_s11 = sand.u32 1, %s520_s15  }
 0x148   : > { %s352_s12 = scalar_lea.sflag [#allocation3], %s351_s11 }
 0x149   : > { %p419_p7 = pnand %p422_p4, %p603_p6 }
 0x14b   : > { %p420_p8 = pneg %p419_p7 }
 0x14d   : > { %515 = dma.done.wait (%p420_p8), %s352_s12, 128  }
 0x14e   : > { %517 = vsyncadd (%p420_p8), %s352_s12, 4294967168  ;;  %p14_p9 = scmp.ge.s32.totalorder %s586_s21, 4   ;;  %s695_s15 = smov %s524_s16 }
 0x14f   : > { %s696_s16 = smov %s528_s17  ;;  %s697_s17 = smov %s597_s24 }
 0x150   : > { %s698_s18 = smov %s586_s21  ;;  %16 = sbr.rel (!%p14_p9) target bundleno = 3 (0x3), region = 71 }
 0x155   :  { %358 = vsyncpa [#allocation3], 1 }
 0x156   :  { %360 = vsyncpa [#allocation3 + $0x1], 1 }

</bundles_post_ra>
